<compile_context>
chip_gen: v7x
topology: tpu7x:2x2x1
jax: 0.10.0
libtpu: 0.0.40
codegen_flags: <defaults>
</compile_context>

<pallas_src>
import functools
import math

import numpy as np
import jax
import jax.numpy as jnp
from jax.experimental import pallas as pl
from jax.experimental.pallas import tpu as pltpu


def _add_pe_kernel(start_ref, x_ref, pe_ref, o_ref, *, offset, seq_len, max_len):
    """Sinusoidal path. One grid step == one batch element.

    start_ref : (B,) int32 in SMEM (scalar prefetch)
    x_ref     : (1, S, P, D) block of x in VMEM
    pe_ref    : (max_len, D) full table, resident in VMEM across the grid
    """
    b = pl.program_id(0)
    # Per-batch dynamic row start into the table; clamp so it can never read out of range.
    row0 = jnp.clip(start_ref[b] + offset, 0, max_len - seq_len)
    pe_rows = pe_ref[pl.ds(row0, seq_len), :]                      # (S, D), contiguous rows
    # Broadcast over the patch axis (axis 2 of the x block).
    o_ref[...] = x_ref[...] + pe_rows[None, :, None, :].astype(x_ref.dtype)


def _add_te_kernel(x_ref, te_ref, o_ref):
    """Learned-embedding path: out = x + time_embedding (broadcast over B and P)."""
    o_ref[...] = x_ref[...] + te_ref[...][None, :, None, :].astype(x_ref.dtype)


def make_sinusoidal_pe(d_model, max_len):
    """Matches the PyTorch buffer construction exactly; returned dense as [max_len, D]."""
    position = np.arange(max_len)[:, None].astype(np.float32)
    div_term = np.exp(
        np.arange(0, d_model, 2).astype(np.float32) * (-math.log(10000.0) / d_model)
    )
    pe = np.zeros((max_len, d_model), dtype=np.float32)
    pe[:, 0::2] = np.sin(position * div_term)
    pe[:, 1::2] = np.cos(position * div_term)
    return jnp.asarray(pe)


def time_encoding_forward(x, start, *, pe, time_embedding, offset, learn_time_embedding):
    """x: [B, S, P, D] float32; start: [B] int32; pe: [max_len, D] (or [max_len,1,D]);
    time_embedding: any shape reshapeable to [S, D]."""
    B, S, P, D = x.shape

    compiler_params = pltpu.CompilerParams(
        dimension_semantics=("parallel",),           # per-batch tiles are independent
        vmem_limit_bytes=48 * 1024 * 1024,           # OK on v5e/v6e (128 MiB) and v7x (64 MiB)
    )

    if learn_time_embedding:
        te2d = time_embedding.reshape(S, D)          # dense [S, D]
        grid_spec = pltpu.PrefetchScalarGridSpec(
            num_scalar_prefetch=0,
            grid=(B,),
            in_specs=[
                pl.BlockSpec((1, S, P, D), lambda b: (b, 0, 0, 0)),
                # Tiny table: full-shape block, constant index_map -> fetched once, resident.
                pl.BlockSpec((S, D), lambda b: (0, 0)),
            ],
            out_specs=pl.BlockSpec((1, S, P, D), lambda b: (b, 0, 0, 0)),
        )
        out = pl.pallas_call(
            _add_te_kernel,
            out_shape=jax.ShapeDtypeStruct(x.shape, x.dtype),
            grid_spec=grid_spec,
            compiler_params=compiler_params,
        )(x, te2d)
    else:
        pe2d = pe.reshape(-1, D)                     # dense [max_len, D]
        max_len = pe2d.shape[0]
        kernel = functools.partial(
            _add_pe_kernel, offset=offset, seq_len=S, max_len=max_len
        )
        grid_spec = pltpu.PrefetchScalarGridSpec(
            num_scalar_prefetch=1,                   # `start` lands in SMEM
            grid=(B,),
            in_specs=[
                pl.BlockSpec((1, S, P, D), lambda b, start_ref: (b, 0, 0, 0)),
                # Full table resident in VMEM; rows sliced dynamically inside the kernel.
                pl.BlockSpec((max_len, D), lambda b, start_ref: (0, 0)),
            ],
            out_specs=pl.BlockSpec((1, S, P, D), lambda b, start_ref: (b, 0, 0, 0)),
        )
        out = pl.pallas_call(
            kernel,
            out_shape=jax.ShapeDtypeStruct(x.shape, x.dtype),
            grid_spec=grid_spec,
            compiler_params=compiler_params,
        )(start, x, pe2d)

    # nn.Dropout in eval mode == identity.
    return out


if __name__ == "__main__":
    # Small shapes consistent with the module's forward: [B, seq_len, total_patches, d_model]
    B, S, P, D = 2, 4, 16, 32
    num_stack, frameskip = S, 1
    max_len = 64
    offset = num_stack * frameskip                   # self.offset

    key = jax.random.PRNGKey(0)
    k_x, k_te = jax.random.split(key, 2)
    x = jax.random.normal(k_x, (B, S, P, D), dtype=jnp.float32)
    start = jnp.array([0, 3], dtype=jnp.int32)

    # Deterministic parameter / buffer init (shapes from __init__, stored dense).
    pe = make_sinusoidal_pe(D, max_len)              # [max_len, D]
    time_embedding = jax.random.normal(k_te, (1, num_stack, 1, D), dtype=jnp.float32)

    # Sinusoidal (learn_time_embedding=False) path.
    out_pe = time_encoding_forward(
        x, start, pe=pe, time_embedding=time_embedding,
        offset=offset, learn_time_embedding=False,
    )
    # Learned (learn_time_embedding=True) path.
    out_te = time_encoding_forward(
        x, start, pe=pe, time_embedding=time_embedding,
        offset=offset, learn_time_embedding=True,
    )
    jax.block_until_ready((out_pe, out_te))

    # Pure-JAX references for correctness check.
    rows = start[:, None] + offset + jnp.arange(S)[None, :]      # [B, S]
    ref_pe = x + pe[rows][:, :, None, :]                         # broadcast over P
    ref_te = x + time_embedding                                  # broadcast over B, P
    assert jnp.allclose(out_pe, ref_pe, atol=1e-6), "sinusoidal path mismatch"
    assert jnp.allclose(out_te, ref_te, atol=1e-6), "learned-embedding path mismatch"

    print("KERNEL_OK")
</pallas_src>

<mosaic_0001>
module attributes {stable_mosaic.version = 11 : i64} {
  func.func @_add_pe_kernel(%arg0: i32, %arg1: memref<2xi32, #tpu.memory_space<smem>>, %arg2: memref<1x4x16x32xf32, #tpu.memory_space<vmem>>, %arg3: memref<64x32xf32, #tpu.memory_space<vmem>>, %arg4: memref<1x4x16x32xf32, #tpu.memory_space<vmem>>) attributes {dimension_semantics = [#tpu.dimension_semantics<parallel>], iteration_bounds = array<i64: 2>, scalar_prefetch = 1 : i64, scratch_operands = 0 : i64, tpu.core_type = #tpu.core_type<tc>, window_params = [{transform_indices = @transform_0, window_bounds = array<i64: 1, 4, 16, 32>}, {pipeline_mode = #tpu.pipeline_mode<synchronous>, transform_indices = @transform_1, window_bounds = array<i64: 64, 32>}, {transform_indices = @transform_2, window_bounds = array<i64: 1, 4, 16, 32>}]} {
    %0 = arith.index_cast %arg0 : i32 to index
    %1 = memref.load %arg1[%0] : memref<2xi32, #tpu.memory_space<smem>>
    %c4_i32 = arith.constant 4 : i32
    %2 = arith.addi %1, %c4_i32 : i32
    %c0_i32 = arith.constant 0 : i32
    %c60_i32 = arith.constant 60 : i32
    %3 = arith.maxsi %c0_i32, %2 : i32
    %4 = arith.minsi %c60_i32, %3 : i32
    %5 = arith.index_cast %4 : i32 to index
    %c0 = arith.constant 0 : index
    %6 = vector.load %arg3[%5, %c0] : memref<64x32xf32, #tpu.memory_space<vmem>>, vector<4x32xf32>
    %c0_0 = arith.constant 0 : index
    %c0_1 = arith.constant 0 : index
    %c0_2 = arith.constant 0 : index
    %c0_3 = arith.constant 0 : index
    %7 = vector.load %arg2[%c0_0, %c0_1, %c0_2, %c0_3] : memref<1x4x16x32xf32, #tpu.memory_space<vmem>>, vector<1x4x16x32xf32>
    %8 = vector.shape_cast %6 : vector<4x32xf32> to vector<1x4x1x32xf32>
    %9 = vector.broadcast %8 : vector<1x4x1x32xf32> to vector<1x4x16x32xf32>
    %10 = arith.addf %7, %9 : vector<1x4x16x32xf32>
    %c0_4 = arith.constant 0 : index
    %c0_5 = arith.constant 0 : index
    %c0_6 = arith.constant 0 : index
    %c0_7 = arith.constant 0 : index
    %11 = vector.load %arg4[%c0_4, %c0_5, %c0_6, %c0_7] : memref<1x4x16x32xf32, #tpu.memory_space<vmem>>, vector<1x4x16x32xf32>
    tpu.vector_store %arg4[%c0_4, %c0_5, %c0_6, %c0_7], %10 {strides = array<i32>} : memref<1x4x16x32xf32, #tpu.memory_space<vmem>>, vector<1x4x16x32xf32>,
    return
  }
  func.func @transform_0(%arg0: i32, %arg1: memref<2xi32, #tpu.memory_space<smem>>) -> (i32, i32, i32, i32) {
    %c0_i32 = arith.constant 0 : i32
    %c0_i32_0 = arith.constant 0 : i32
    %c0_i32_1 = arith.constant 0 : i32
    %c0_i32_2 = arith.constant 0 : i32
    return %arg0, %c0_i32, %c0_i32_0, %c0_i32_1 : i32, i32, i32, i32
  }
  func.func @transform_1(%arg0: i32, %arg1: memref<2xi32, #tpu.memory_space<smem>>) -> (i32, i32) {
    %c0_i32 = arith.constant 0 : i32
    %c0_i32_0 = arith.constant 0 : i32
    %c0_i32_1 = arith.constant 0 : i32
    return %c0_i32, %c0_i32_0 : i32, i32
  }
  func.func @transform_2(%arg0: i32, %arg1: memref<2xi32, #tpu.memory_space<smem>>) -> (i32, i32, i32, i32) {
    %c0_i32 = arith.constant 0 : i32
    %c0_i32_0 = arith.constant 0 : i32
    %c0_i32_1 = arith.constant 0 : i32
    %c0_i32_2 = arith.constant 0 : i32
    return %arg0, %c0_i32, %c0_i32_0, %c0_i32_1 : i32, i32, i32, i32
  }
}

</mosaic_0001>

<bundles_post_ra>
// kernel: tpu_custom_call.1
= control target key start
LH: loop header
LB: loop body
LE: loop exit
PB: predicated region body
PF: predicated region fallthrough
CT: control target
= control target key end

     0   :  { %s742_s0 = inlined_call_operand.vmem [shape: s32[2], index: 0, kind: input, shape index: {}]   ;;  %s743_s1 = inlined_call_operand.hbm [shape: f32[2,4,16,32], index: 1, kind: input, shape index: {}]   ;;  %s744_s2 = inlined_call_operand.vmem [shape: f32[64,32], index: 2, kind: input, shape index: {}]   ;;  %s745_s3 = inlined_call_operand.hbm [shape: f32[2,4,16,32], index: 3, kind: output, shape index: {}]  }
   0x1   :  { %s8_s14 = sshll.u32 %s742_s0, 4  ;;  %s9_s14 = int_to_ptr.vmem [resolvable:$true] %s8_s14 }
   0x2   :  { %s411_s15 = scalar_lea.vmem %s9_s14, 16  ;;  %p416_p1 = scmp.lt.s32.totalorder %s9_s14, %s9_s14 }
   0x3   :  { %p412_p0 = scmp.ne.s32.totalorder %s9_s14, %s411_s15  ;;  %p417_p2 = scmp.lt.s32.totalorder %s411_s15, %s411_s15 }
   0x5   :  { %p418_p3 = por %p417_p2, %p416_p1 }
   0x7   :  { %p419_p4 = pnand %p418_p3, %p412_p0 }
   0x9   :  { %422 = shalt.err (!%p419_p4)  }
   0xa   :  { %s523_s16 = smov [#allocation3]  }
   0xb   :  { %11 = dma.vmem_to_smem %s9_s14, 16, %s523_s16, [#allocation2] }
   0xc   :  { %497 = dma.done.wait [#allocation2], 16 }
   0xd   :  { %498 = vsyncadd [#allocation2], 4294967280 }
   0xe   :  { %13 = sfence }
   0xf   :  { %14 = vsyncpa [#allocation5], 0 }
  0x10   :  { %16 = vsyncpa [#allocation5 + $0x1], 0 }
  0x11   :  { %17 = vsyncpa [#allocation6], 0 }
  0x12   :  { %19 = vsyncpa [#allocation6 + $0x1], 0  ;;  %s554_s17 = smov 0   ;;  %s556_s0 = smov 0  }
  0x13   :  { %s558_s18 = smov 0   ;;  %s560_s19 = smov 0  }
  0x14 LB: > { %s575_s20 = sadd.s32 4294967295, %s521_s19   ;;  %s335_s21 = sadd.s32 4294967294, %s521_s19   ;;  %s521_s19 = sphi %s560_s19, %s758_s19   ;;  %s517_s18 = sphi %s558_s18, %s757_s18   ;;  %s513_s0 = sphi %s556_s0, %s756_s0   ;;  %s509_s17 = sphi %s554_s17, %s755_s17  }
  0x15   : > { %s579_s22 = sadd.s32 1, %s521_s19   ;;  %s32_s23 = sadd.s32 1, %s517_s18 }
  0x16   : > { %s29_s24 = ssub.s32 %s521_s19, %s579_s22  ;;  %p39_p5 = scmp.ne.s32.totalorder %s517_s18, %s513_s0 }
  0x17   : > { %p30_p6 = scmp.eq.s32.totalorder %s29_s24, 0  ;;  %p40_p7 = scmp.eq.s32.totalorder %s521_s19, 0 }
  0x18   : > { %p45_p8 = scmp.ne.s32.totalorder %s513_s0, %s509_s17  ;;  %p46_p9 = scmp.eq.s32.totalorder %s575_s20, 0 }
  0x19   : > { %s591_s25 = scalar_select %p30_p6, %s517_s18, %s32_s23  }
  0x1a   : > { %p593_p10 = por %p40_p7, %p39_p5  ;;  %p597_p11 = por %p46_p9, %p45_p8 }
  0x1b   : > { %p90_p12 = scmp.eq.s32.totalorder %s575_s20, 1  ;;  %p96_p13 = scmp.eq.s32.totalorder %s335_s21, 1 }
  0x1c   : > { %p371_p1 = scmp.lt.s32.totalorder %s521_s19, 2  ;;  %s119_s30 = sand.u32 1, %s517_s18  }
  0x1d   : > { %p604_p2 = por %p90_p12, %p39_p5  ;;  %p608_p3 = por %p96_p13, %p45_p8 }
  0x1e   : > { %s355_s4 = sshll.u32 %s521_s19, 10  ;;  %s338_s5 = sshll.u32 %s119_s30, 6 }
  0x1f   : > { %s749_s28 = scalar_select %p604_p2, 1, 0 }
  0x20   : > { %s750_s29 = scalar_select %p608_p3, 1, 0 }
  0x21   : > { %s617_s8 = scalar_lea.hbm %s743_s1, %s355_s4  ;;  %s123_s9 = scalar_lea.vmem [#allocation4], %s338_s5 }
  0x22   : > { %s130_s10 = sshll.u32 %s123_s9, 4  ;;  %p621_p4 = pnand %p371_p1, %p593_p10  ;;  %s625_s10 = int_to_ptr.vmem [resolvable:$true] %s130_s10 }
  0x23   : > { %s627_s12 = scalar_lea.sflag [#allocation5], %s119_s30  ;;  %s423_s13 = scalar_lea.hbm %s617_s8, 1024 }
  0x24   : > { %p424_p5 = scmp.ne.s32.totalorder %s617_s8, %s423_s13  ;;  %p425_p6 = pneg %p621_p4 }
  0x25   : > { %s428_s16 = scalar_lea.hbm %s743_s1, 2048  ;;  %p429_p9 = scmp.lt.u32.totalorder %s617_s8, %s743_s1 }
  0x26   : > { %p426_p7 = pnand %p425_p6, %p424_p5  ;;  %p430_p10 = scmp.lt.u32.totalorder %s428_s16, %s423_s13 }
  0x27   : > { %p432_p13 = scmp.lt.u32.totalorder %s423_s13, %s617_s8 }
  0x28   : > { %p427_p8 = pneg %p426_p7  ;;  %p431_p12 = por %p430_p10, %p429_p9 }
  0x2a   : > { %p433_p1 = por %p432_p13, %p431_p12 }
  0x2c   : > { %p434_p0 = pnand %p433_p1, %p427_p8 }
  0x2e   : > { %437 = shalt.err (!%p434_p0)
}
  0x2f   : > { %s438_s24 = scalar_lea.vmem %s625_s10, 1024  ;;  %s524_s26 = smov [#allocation4]  }
  0x30   : > { %p439_p5 = scmp.ne.s32.totalorder %s625_s10, %s438_s24  ;;  %s443_s30 = sshll.u32 %s524_s26, 4  ;;  %s444_s30 = int_to_ptr.vmem [resolvable:$false] %s443_s30 }
  0x31   : > { %s445_s4 = scalar_lea.vmem %s444_s30, 2048  ;;  %p446_p2 = scmp.lt.s32.totalorder %s625_s10, %s444_s30 }
  0x32   : > { %p441_p7 = pnand %p439_p5, %p425_p6  ;;  %p447_p9 = scmp.lt.s32.totalorder %s445_s4, %s438_s24 }
  0x34   : > { %p442_p3 = pneg %p441_p7  ;;  %p448_p10 = por %p447_p9, %p446_p2 }
  0x36   : > { %p449_p12 = pnand %p448_p10, %p442_p3 }
  0x38   : > { %452 = shalt.err (!%p449_p12)
}
  0x39   : > { %s525_s5 = smov 128   ;;  %s526_s6 = smov 8  }
  0x3a   : > { %366 = dma.hbm_to_vmem [thread:$0]  (!%p621_p4), %s617_s8, 1024, %s625_s10, %s627_s12, %s525_s5, %s525_s5, %s526_s6  }
  0x3b   : > { %p341_p0 = scmp.ge.s32.totalorder %s521_s19, 1  ;;  %p138_p6 = scmp.lt.s32.totalorder %s521_s19, 3 }
  0x3d   : > { %p139_p8 = pnand %p341_p0, %p138_p6 }
  0x3e   : > { %s658_s7 = sand.u32 (!%p139_p8), 1, %s513_s0  }
  0x3f   : > { %142 = sbr.rel (%p139_p8) target bundleno = 110 (0x6e), region = 28  ;;  %s342_s9 = sshll.u32 (!%p139_p8), %s658_s7, 6 }
  0x40   : > { %s145_s13 = scalar_lea.sflag (!%p139_p8), [#allocation5], %s658_s7  ;;  %s664_s14 = scalar_lea.vmem (!%p139_p8), [#allocation4], %s342_s9 }
  0x46   : > { %500 = dma.done.wait (%p597_p11), %s145_s13, 1024  }
  0x47   : > { %502 = vsyncadd (%p597_p11), %s145_s13, 4294966272  ;;  %s169_s8 = sld [smem:[#allocation3 + %s575_s20]]  ;;  %v527_v0 = vmov 1966171168   ;;  %v197_v2 = vlaneseq  ;;  %v177_v10 = vld [vmem:[%s664_s14] sm:$0xff]  ;;  %v178_v11 = vld [vmem:[%s664_s14 + $0x8] sm:$0xff] }
  0x48   : > { %v195_v1 = vunpack.c.l.s4 %v527_v0  ;;  %v179_v13 = vld [vmem:[%s664_s14 + $0x10] sm:$0xff]  ;;  %vm238_vm0 = vcmask 261120   ;;  %v180_v16 = vld [vmem:[%s664_s14 + $0x18] sm:$0xff]  ;;  %v181_v17 = vld [vmem:[%s664_s14 + $0x20] sm:$0xff]  ;;  %s168_s15 = scalar_lea.vmem [#allocation7], %s342_s9  ;;  %s358_s21 = sshll.u32 %s575_s20, 10 }
  0x49   : > { %v198_v4 = vshrl.u32 %v197_v2, 7  ;;  %v182_v18 = vld [vmem:[%s664_s14 + $0x28] sm:$0xff]  ;;  %s261_s16 = sshll.u32 %s168_s15, 4  ;;  %v183_v28 = vld [vmem:[%s664_s14 + $0x30] sm:$0xff]  ;;  %v184_v29 = vld [vmem:[%s664_s14 + $0x38] sm:$0xff]  ;;  %s696_s24 = scalar_lea.hbm %s745_s3, %s358_s21  ;;  %s687_s16 = int_to_ptr.vmem [resolvable:$true] %s261_s16 }
  0x4a   : > { %v196_v3 = vunpack.c.0.s8 %v195_v1  ;;  %s248_s26 = scalar_lea.sflag [#allocation6], %s658_s7  ;;  %s453_s30 = scalar_lea.vmem %s687_s16, 1024 }
  0x4b   : > { %v212_v6 = vsub.s32 0, %v198_v4  ;;  %p454_p11 = scmp.ne.s32.totalorder %s687_s16, %s453_s30  ;;  %p752_p4 = scmp.ne.s32.totalorder %s749_s28, 0 }
  0x4c   : > { %v199_v5 = vsub.s32 %v196_v3, %v198_v4  ;;  %s528_s4 = smov [#allocation7]  }
  0x4d   : > { %s170_s10 = sadd.s32 4, %s169_s8  ;;  %p455_p13 = pnand %p454_p11, %p752_p4 }
  0x4e   : > { %p171_p2 = scmp.gt.s32.totalorder %s170_s10, 0  ;;  %p344_p3 = scmp.lt.s32.totalorder %s170_s10, 60 }
  0x4f   : > { %p456_p1 = pneg %p455_p13  ;;  %s457_s5 = sshll.u32 %s528_s4, 4  ;;  %s458_s5 = int_to_ptr.vmem [resolvable:$false] %s457_s5 }
  0x50   : > { %s760_s10 = smov (!%p171_p2, %s170_s10), 0  ;;  %s459_s6 = scalar_lea.vmem %s458_s5, 2048 }
  0x51   : > { %s762_s10 = smov (!%p344_p3, %s760_s10), 60  ;;  %p460_p5 = scmp.lt.s32.totalorder %s687_s16, %s458_s5 }
  0x52   : > { %s175_s12 = scalar_lea.vmem %s744_s2, %s762_s10  ;;  %p461_p7 = scmp.lt.s32.totalorder %s459_s6, %s453_s30 }
  0x53   : > { %v349_v7 = vld.sshfl [vmem:[%s175_s12] sm:$0x33 pattern:$0x75316420] }
  0x54   : > { %v200_v8 = vrot.slane %v349_v7, %v199_v5  ;;  %v193_v9 = vcombine.high %v349_v7, %v349_v7  ;;  %p462_p9 = por %p461_p7, %p460_p5 }
  0x56   : > { %v213_v12 = vrot.slane %v200_v8, %v212_v6  ;;  %v207_v14 = vrot.slane %v193_v9, %v199_v5  ;;  %v208_v15 = vcombine.high %v200_v8, %v200_v8  ;;  %p463_p10 = pnand %p462_p9, %p456_p1 }
  0x58   : > { %v230_v19 = vadd.f32 %v213_v12, %v177_v10  ;;  %v231_v20 = vadd.f32 %v213_v12, %v178_v11  ;;  %v217_v21 = vrot.slane %v207_v14, %v212_v6  ;;  %v221_v22 = vrot.slane %v208_v15, %v212_v6 }
  0x59   : > { %v209_v23 = vcombine.high %v207_v14, %v207_v14 }
  0x5a   : > { %239 = vst.msk [vmem:[%s168_s15] sm:$0xff] %vm238_vm0, %v230_v19  ;;  %240 = vst.msk [vmem:[%s168_s15 + $0x8] sm:$0xff] %vm238_vm0, %v231_v20  ;;  %v232_v24 = vadd.f32 %v217_v21, %v179_v13  ;;  %v233_v25 = vadd.f32 %v217_v21, %v180_v16  ;;  %v234_v26 = vadd.f32 %v221_v22, %v181_v17 }
  0x5b   : > { %v235_v27 = vadd.f32 %v221_v22, %v182_v18  ;;  %v225_v30 = vrot.slane %v209_v23, %v212_v6 }
  0x5c   : > { %241 = vst.msk [vmem:[%s168_s15 + $0x10] sm:$0xff] %vm238_vm0, %v232_v24  ;;  %242 = vst.msk [vmem:[%s168_s15 + $0x18] sm:$0xff] %vm238_vm0, %v233_v25 }
  0x5d   : > { %243 = vst.msk [vmem:[%s168_s15 + $0x20] sm:$0xff] %vm238_vm0, %v234_v26  ;;  %244 = vst.msk [vmem:[%s168_s15 + $0x28] sm:$0xff] %vm238_vm0, %v235_v27  ;;  %v236_v31 = vadd.f32 %v225_v30, %v183_v28  ;;  %v237_v32 = vadd.f32 %v225_v30, %v184_v29 }
  0x5f   : > { %245 = vst.msk [vmem:[%s168_s15 + $0x30] sm:$0xff] %vm238_vm0, %v236_v31  ;;  %246 = vst.msk [vmem:[%s168_s15 + $0x38] sm:$0xff] %vm238_vm0, %v237_v32 }
  0x60   : > { %466 = shalt.err (!%p463_p10)
}
  0x61   : > { %s467_s9 = scalar_lea.hbm %s696_s24, 1024  ;;  %s471_s8 = scalar_lea.hbm %s745_s3, 2048 }
  0x62   : > { %p468_p12 = scmp.ne.s32.totalorder %s696_s24, %s467_s9  ;;  %p472_p8 = scmp.lt.u32.totalorder %s696_s24, %s745_s3 }
  0x63   : > { %p473_p2 = scmp.lt.u32.totalorder %s471_s8, %s467_s9  ;;  %p475_p11 = scmp.lt.u32.totalorder %s467_s9, %s696_s24 }
  0x64   : > { %p469_p0 = pnand %p468_p12, %p752_p4 }
  0x65   : > { %p474_p3 = por %p473_p2, %p472_p8 }
  0x66   : > { %p470_p6 = pneg %p469_p0 }
  0x67   : > { %p476_p13 = por %p475_p11, %p474_p3 }
  0x69   : > { %p477_p1 = pnand %p476_p13, %p470_p6 }
  0x6b   : > { %480 = shalt.err (!%p477_p1)
}
  0x6c   : > { %s529_s11 = smov 128   ;;  %s530_s12 = smov 8  }
  0x6d   : > { %361 = dma.vmem_to_hbm [thread:$0]  (%p752_p4), %s687_s16, 1024, %s696_s24, %s248_s26, %s529_s11, %s529_s11, %s530_s12  }
  0x6e PF: > { %s276_s15 = sand.u32 1, %s509_s17   ;;  %p753_p5 = scmp.ne.s32.totalorder %s750_s29, 0 }
  0x6f   : > { %p754_p7 = scmp.ge.s32.totalorder %s521_s19, 2  ;;  %s277_s21 = scalar_lea.sflag [#allocation6], %s276_s15 }
  0x71   : > { %p368_p9 = pnand %p754_p7, %p753_p5 }
  0x73   : > { %504 = dma.done.wait (!%p368_p9), %s277_s21, 1024  }
  0x74   : > { %506 = vsyncadd (!%p368_p9), %s277_s21, 4294966272  ;;  %p22_p10 = scmp.ge.s32.totalorder %s579_s22, 4   ;;  %s755_s17 = smov %s513_s0 }
  0x75   : > { %s756_s0 = smov %s517_s18  ;;  %s757_s18 = smov %s591_s25 }
  0x76   : > { %s758_s19 = smov %s579_s22  ;;  %24 = sbr.rel (!%p22_p10) target bundleno = 20 (0x14), region = 74 }
  0x7d   :  { %282 = vsyncpa [#allocation5], 1 }
  0x7e   :  { %284 = vsyncpa [#allocation5 + $0x1], 1 }
  0x7f   :  { %285 = vsyncpa [#allocation6], 1 }
  0x80   :  { %287 = vsyncpa [#allocation6 + $0x1], 1 }

</bundles_post_ra>
